<compile_context>
chip_gen: v6e
topology: v6e:2x2x1
jax: 0.10.0
libtpu: 0.0.40
codegen_flags: <defaults>
</compile_context>

<pallas_src>
import functools

import jax
import jax.numpy as jnp
from jax.experimental import pallas as pl
from jax.experimental.pallas import tpu as pltpu


def _round_up(n: int, m: int) -> int:
    return ((n + m - 1) // m) * m


# ---------------------------------------------------------------------------
# Parameter init / packing
# ---------------------------------------------------------------------------
def init_params(key, state_size, action_size, hidden_size=64):
    """Deterministic init mimicking nn.Linear default (uniform +/- 1/sqrt(fan_in)).

    Weights are stored as [in_features, out_features] so the kernel computes
    y = x @ W + b (equivalent to PyTorch's x @ W^T). Biases are [1, out]."""
    ks = jax.random.split(key, 6)

    def linear(kw, kb, fan_in, fan_out):
        bound = 1.0 / jnp.sqrt(fan_in)
        w = jax.random.uniform(kw, (fan_in, fan_out), jnp.float32, -bound, bound)
        b = jax.random.uniform(kb, (1, fan_out), jnp.float32, -bound, bound)
        return w, b

    w1, b1 = linear(ks[0], ks[1], state_size, hidden_size)
    w2, b2 = linear(ks[2], ks[3], hidden_size, hidden_size)
    w3, b3 = linear(ks[4], ks[5], hidden_size, action_size)
    return (w1, b1, w2, b2, w3, b3)


def pack_params(params, state_size, hidden_size, action_size):
    """Pack the 6 parameter tensors into one bf16 weight buffer and one f32
    bias buffer.  Hidden/action lanes are padded to 128 (lane-dense matmuls);
    the state (K) dim is only padded to a multiple of 8.  The padded action
    lanes of the third bias row carry -1e30 so the padded logits vanish in the
    softmax without any in-kernel masking."""
    w1, b1, w2, b2, w3, b3 = params

    S8 = _round_up(max(state_size, 1), 8)
    H_P = _round_up(max(hidden_size, 1), 128)
    A_P = _round_up(max(action_size, 1), 128)
    C = max(H_P, A_P)

    # Rows: [0, S8) -> W1 ; [S8, S8+H_P) -> W2 ; [S8+H_P, S8+2*H_P) -> W3.
    w_packed = jnp.zeros((S8 + 2 * H_P, C), jnp.bfloat16)
    w_packed = w_packed.at[:state_size, :hidden_size].set(w1.astype(jnp.bfloat16))
    w_packed = w_packed.at[S8:S8 + hidden_size, :hidden_size].set(
        w2.astype(jnp.bfloat16))
    w_packed = w_packed.at[S8 + H_P:S8 + H_P + hidden_size, :action_size].set(
        w3.astype(jnp.bfloat16))

    # Biases stay f32 (rows 0/1/2 = b1/b2/b3), padded to 8 sublanes.
    b_packed = jnp.zeros((8, C), jnp.float32)
    b_packed = b_packed.at[0, :hidden_size].set(b1.reshape(-1))
    b_packed = b_packed.at[1, :hidden_size].set(b2.reshape(-1))
    # Row 2: valid lanes = b3, padded lanes = -1e30 (folded softmax mask).
    b_row3 = jnp.full((C,), -1e30, jnp.float32).at[:action_size].set(b3.reshape(-1))
    b_packed = b_packed.at[2, :].set(b_row3)

    meta = (state_size, hidden_size, action_size, S8, H_P, A_P)
    return w_packed, b_packed, meta


# ---------------------------------------------------------------------------
# Kernel
# ---------------------------------------------------------------------------
def _policy_mlp_kernel(w_ref, b_ref, x_ref, o_ref, *, S8, H_P, A_P):
    # Static views of the packed, resident parameter buffers (free).
    w1 = w_ref[0:S8, 0:H_P]                          # bf16 [S8,  H_P]
    w2 = w_ref[S8:S8 + H_P, 0:H_P]                   # bf16 [H_P, H_P]
    w3 = w_ref[S8 + H_P:S8 + 2 * H_P, 0:A_P]         # bf16 [H_P, A_P]
    b1 = b_ref[0:1, 0:H_P]                           # f32  [1, H_P]
    b2 = b_ref[1:2, 0:H_P]
    b3 = b_ref[2:3, 0:A_P]                           # padded lanes are -1e30

    # Layer 1: Linear + ReLU  (bf16 MXU operands, K = S8, f32 accumulate).
    x = x_ref[...]                                   # bf16 [TB, S8]
    h1 = jnp.dot(x, w1, preferred_element_type=jnp.float32) + b1
    h1 = jnp.maximum(h1, 0.0)

    # Layer 2: Linear + ReLU.
    h2 = jnp.dot(h1.astype(jnp.bfloat16), w2,
                 preferred_element_type=jnp.float32) + b2
    h2 = jnp.maximum(h2, 0.0)

    # Layer 3: Linear. Padded action lanes get -1e30 from b3 (W3 pad cols = 0),
    # so no iota/where is needed before the softmax.
    logits = jnp.dot(h2.astype(jnp.bfloat16), w3,
                     preferred_element_type=jnp.float32) + b3

    # Numerically stable softmax; EUP reciprocal + one Newton refinement step.
    m = jnp.max(logits, axis=-1, keepdims=True)
    e = jnp.exp(logits - m)
    denom = jnp.sum(e, axis=-1, keepdims=True)
    inv = pl.reciprocal(denom, approx=True)
    inv = inv * (2.0 - denom * inv)                  # Newton step -> ~1 ulp (f32)
    o_ref[...] = (e * inv).astype(o_ref.dtype)       # bf16 lane-dense store


# ---------------------------------------------------------------------------
# Wrapper
# ---------------------------------------------------------------------------
def policy_network_forward(x, packed, *, batch_tile=2048):
    """x: [B, state_size] (f32 or bf16). Returns action probabilities
    [B, action_size] in bf16 (softmax computed in f32 inside the kernel)."""
    w_packed, b_packed, (state_size, hidden_size, action_size,
                         S8, H_P, A_P) = packed
    B = x.shape[0]

    # Batch tile: multiple of 16 (bf16 sublane packing); sized so the grid has
    # at least 2 steps whenever B allows it (keeps both v7x TensorCores busy).
    batch_tile = max(16, _round_up(batch_tile, 16))
    TB = min(batch_tile, _round_up(pl.cdiv(B, 2), 16))
    Bp = _round_up(B, TB)

    # Narrow bf16 input: only batch padding + state dim padded to a multiple
    # of 8 (no 128-lane feature padding, no extra wrapper-side f32 copy).
    if Bp == B and S8 == state_size and x.dtype == jnp.bfloat16:
        x_in = x
    else:
        x_in = jnp.zeros((Bp, S8), jnp.bfloat16).at[:B, :state_size].set(
            x.astype(jnp.bfloat16))

    kernel = functools.partial(_policy_mlp_kernel, S8=S8, H_P=H_P, A_P=A_P)

    out = pl.pallas_call(
        kernel,
        out_shape=jax.ShapeDtypeStruct((Bp, A_P), jnp.bfloat16),
        grid=(Bp // TB,),
        in_specs=[
            # Packed weights / biases: same block every step -> stay resident.
            pl.BlockSpec(w_packed.shape, lambda i: (0, 0)),
            pl.BlockSpec(b_packed.shape, lambda i: (0, 0)),
            # Activations tiled over the batch (double-buffered by Pallas);
            # last block dim == full array dim, so the narrow block is legal.
            pl.BlockSpec((TB, S8), lambda i: (i, 0)),
        ],
        out_specs=pl.BlockSpec((TB, A_P), lambda i: (i, 0)),
        compiler_params=pltpu.CompilerParams(
            dimension_semantics=("parallel",),   # megacore sharding on v7x
        ),
    )(w_packed, b_packed, x_in)

    # Downstream sampling could consume the padded (Bp, A_P) block directly
    # (padded action lanes are exactly 0); slice here to match the reference
    # interface.  Padded batch rows (>= B) are garbage and must stay sliced.
    return out[:B, :action_size]


# ---------------------------------------------------------------------------
# Demo / correctness check
# ---------------------------------------------------------------------------
if __name__ == "__main__":
    key = jax.random.PRNGKey(0)
    k_params, k_x = jax.random.split(key)

    batch = 2
    state_size = 8
    hidden_size = 32
    action_size = 4

    params = init_params(k_params, state_size, action_size, hidden_size)
    packed = pack_params(params, state_size, hidden_size, action_size)
    x = jax.random.normal(k_x, (batch, state_size), dtype=jnp.float32)

    probs = policy_network_forward(x, packed)
    probs = jax.block_until_ready(probs)

    # Sanity checks: correct shape and rows sum to ~1 (bf16 output rounding).
    assert probs.shape == (batch, action_size)
    probs_f32 = probs.astype(jnp.float32)
    assert jnp.allclose(jnp.sum(probs_f32, axis=-1), 1.0, atol=2e-2)

    # Pure-JAX reference with the same bf16-weight / f32-accumulate math.
    w1, b1, w2, b2, w3, b3 = params

    def bdot(a, w):
        return jnp.dot(a.astype(jnp.bfloat16), w.astype(jnp.bfloat16),
                       preferred_element_type=jnp.float32)

    h1 = jnp.maximum(bdot(x, w1) + b1, 0.0)
    h2 = jnp.maximum(bdot(h1, w2) + b2, 0.0)
    ref = jax.nn.softmax(bdot(h2, w3) + b3, axis=-1)

    assert jnp.allclose(probs_f32, ref, atol=1e-2, rtol=1e-2), (
        float(jnp.max(jnp.abs(probs_f32 - ref))))

    print("KERNEL_OK")
</pallas_src>

<mosaic_0001>
module attributes {stable_mosaic.version = 11 : i64} {
  func.func @_policy_mlp_kernel(%arg0: i32, %arg1: memref<264x128xbf16, #tpu.memory_space<vmem>>, %arg2: memref<8x128xf32, #tpu.memory_space<vmem>>, %arg3: memref<16x8xbf16, #tpu.memory_space<vmem>>, %arg4: memref<16x128xbf16, #tpu.memory_space<vmem>>) attributes {dimension_semantics = [#tpu.dimension_semantics<parallel>], iteration_bounds = array<i64: 1>, scalar_prefetch = 0 : i64, scratch_operands = 0 : i64, tpu.core_type = #tpu.core_type<tc>, window_params = [{pipeline_mode = #tpu.pipeline_mode<synchronous>, transform_indices = @transform_0, window_bounds = array<i64: 264, 128>}, {pipeline_mode = #tpu.pipeline_mode<synchronous>, transform_indices = @transform_1, window_bounds = array<i64: 8, 128>}, {transform_indices = @transform_2, window_bounds = array<i64: 16, 8>}, {transform_indices = @transform_3, window_bounds = array<i64: 16, 128>}]} {
    %c0 = arith.constant 0 : index
    %c0_0 = arith.constant 0 : index
    %0 = vector.load %arg1[%c0, %c0_0] : memref<264x128xbf16, #tpu.memory_space<vmem>>, vector<8x128xbf16>
    %c8 = arith.constant 8 : index
    %c0_1 = arith.constant 0 : index
    %1 = vector.load %arg1[%c8, %c0_1] : memref<264x128xbf16, #tpu.memory_space<vmem>>, vector<128x128xbf16>
    %c136 = arith.constant 136 : index
    %c0_2 = arith.constant 0 : index
    %2 = vector.load %arg1[%c136, %c0_2] : memref<264x128xbf16, #tpu.memory_space<vmem>>, vector<128x128xbf16>
    %c0_3 = arith.constant 0 : index
    %c0_4 = arith.constant 0 : index
    %3 = vector.load %arg2[%c0_3, %c0_4] : memref<8x128xf32, #tpu.memory_space<vmem>>, vector<1x128xf32>
    %c1 = arith.constant 1 : index
    %c0_5 = arith.constant 0 : index
    %4 = vector.load %arg2[%c1, %c0_5] : memref<8x128xf32, #tpu.memory_space<vmem>>, vector<1x128xf32>
    %c2 = arith.constant 2 : index
    %c0_6 = arith.constant 0 : index
    %5 = vector.load %arg2[%c2, %c0_6] : memref<8x128xf32, #tpu.memory_space<vmem>>, vector<1x128xf32>
    %c0_7 = arith.constant 0 : index
    %c0_8 = arith.constant 0 : index
    %6 = vector.load %arg3[%c0_7, %c0_8] : memref<16x8xbf16, #tpu.memory_space<vmem>>, vector<16x8xbf16>
    %cst = arith.constant dense<0.000000e+00> : vector<16x128xf32>
    %7 = tpu.matmul %6, %0, %cst {dimension_numbers = #tpu.dot_dimension_numbers<[1], [0], [0], [1], [0, 0, 1, 1], [], []>} : vector<16x8xbf16>, vector<8x128xbf16>, vector<16x128xf32> -> vector<16x128xf32>
    %8 = vector.broadcast %3 : vector<1x128xf32> to vector<16x128xf32>
    %9 = arith.addf %7, %8 : vector<16x128xf32>
    %cst_9 = arith.constant 0.000000e+00 : f32
    %10 = vector.broadcast %cst_9 : f32 to vector<16x128xf32>
    %11 = arith.maximumf %9, %10 : vector<16x128xf32>
    %12 = arith.truncf %11 : vector<16x128xf32> to vector<16x128xbf16>
    %cst_10 = arith.constant dense<0.000000e+00> : vector<16x128xf32>
    %13 = tpu.matmul %12, %1, %cst_10 {dimension_numbers = #tpu.dot_dimension_numbers<[1], [0], [0], [1], [0, 0, 1, 1], [], []>} : vector<16x128xbf16>, vector<128x128xbf16>, vector<16x128xf32> -> vector<16x128xf32>
    %14 = vector.broadcast %4 : vector<1x128xf32> to vector<16x128xf32>
    %15 = arith.addf %13, %14 : vector<16x128xf32>
    %cst_11 = arith.constant 0.000000e+00 : f32
    %16 = vector.broadcast %cst_11 : f32 to vector<16x128xf32>
    %17 = arith.maximumf %15, %16 : vector<16x128xf32>
    %18 = arith.truncf %17 : vector<16x128xf32> to vector<16x128xbf16>
    %cst_12 = arith.constant dense<0.000000e+00> : vector<16x128xf32>
    %19 = tpu.matmul %18, %2, %cst_12 {dimension_numbers = #tpu.dot_dimension_numbers<[1], [0], [0], [1], [0, 0, 1, 1], [], []>} : vector<16x128xbf16>, vector<128x128xbf16>, vector<16x128xf32> -> vector<16x128xf32>
    %20 = vector.broadcast %5 : vector<1x128xf32> to vector<16x128xf32>
    %21 = arith.addf %19, %20 : vector<16x128xf32>
    %cst_13 = arith.constant dense<0xFF800000> : vector<16xf32>
    %22 = vector.multi_reduction <maximumf>, %21, %cst_13 [1] : vector<16x128xf32> to vector<16xf32>
    %23 = vector.shape_cast %22 : vector<16xf32> to vector<16x1xf32>
    %24 = vector.broadcast %23 : vector<16x1xf32> to vector<16x128xf32>
    %25 = arith.subf %21, %24 : vector<16x128xf32>
    %26 = math.exp %25 : vector<16x128xf32>
    %cst_14 = arith.constant dense<0.000000e+00> : vector<16xf32>
    %27 = vector.multi_reduction <add>, %26, %cst_14 [1] : vector<16x128xf32> to vector<16xf32>
    %28 = vector.shape_cast %27 : vector<16xf32> to vector<16x1xf32>
    %29 = tpu.reciprocal %28 {approx = true} : vector<16x1xf32> -> vector<16x1xf32>
    %30 = arith.mulf %28, %29 : vector<16x1xf32>
    %cst_15 = arith.constant 2.000000e+00 : f32
    %31 = vector.broadcast %cst_15 : f32 to vector<16x1xf32>
    %32 = arith.subf %31, %30 : vector<16x1xf32>
    %33 = arith.mulf %29, %32 : vector<16x1xf32>
    %34 = vector.broadcast %33 : vector<16x1xf32> to vector<16x128xf32>
    %35 = arith.mulf %26, %34 : vector<16x128xf32>
    %36 = arith.truncf %35 : vector<16x128xf32> to vector<16x128xbf16>
    %c0_16 = arith.constant 0 : index
    %c0_17 = arith.constant 0 : index
    %37 = vector.load %arg4[%c0_16, %c0_17] : memref<16x128xbf16, #tpu.memory_space<vmem>>, vector<16x128xbf16>
    tpu.vector_store %arg4[%c0_16, %c0_17], %36 {strides = array<i32>} : memref<16x128xbf16, #tpu.memory_space<vmem>>, vector<16x128xbf16>,
    return
  }
  func.func @transform_0(%arg0: i32) -> (i32, i32) {
    %c0_i32 = arith.constant 0 : i32
    %c0_i32_0 = arith.constant 0 : i32
    %c0_i32_1 = arith.constant 0 : i32
    return %c0_i32, %c0_i32_0 : i32, i32
  }
  func.func @transform_1(%arg0: i32) -> (i32, i32) {
    %c0_i32 = arith.constant 0 : i32
    %c0_i32_0 = arith.constant 0 : i32
    %c0_i32_1 = arith.constant 0 : i32
    return %c0_i32, %c0_i32_0 : i32, i32
  }
  func.func @transform_2(%arg0: i32) -> (i32, i32) {
    %c0_i32 = arith.constant 0 : i32
    %c0_i32_0 = arith.constant 0 : i32
    return %arg0, %c0_i32 : i32, i32
  }
  func.func @transform_3(%arg0: i32) -> (i32, i32) {
    %c0_i32 = arith.constant 0 : i32
    %c0_i32_0 = arith.constant 0 : i32
    return %arg0, %c0_i32 : i32, i32
  }
}

</mosaic_0001>

<bundles_post_ra>
// kernel: tpu_custom_call.1
= control target key start
LH: loop header
LB: loop body
LE: loop exit
PB: predicated region body
PF: predicated region fallthrough
CT: control target
= control target key end

     0   :  { %8 = vsyncpa [#allocation3], 0  ;;  %s613_s0 = inlined_call_operand.hbm [shape: bf16[264,128], index: 0, kind: input, shape index: {}]   ;;  %s614_s1 = inlined_call_operand.vmem [shape: f32[8,128], index: 1, kind: input, shape index: {}]   ;;  %s615_s2 = inlined_call_operand.vmem [shape: bf16[16,8], index: 2, kind: input, shape index: {}]   ;;  %s616_s3 = inlined_call_operand.hbm [shape: bf16[16,128], index: 3, kind: output, shape index: {}]  }
   0x1   :  { %9 = vsyncpa [#allocation4], 0  ;;  %s540_s12 = smov [#allocation2]  }
   0x2   :  { %s15_s13 = sshll.u32 %s540_s12, 4  ;;  %s16_s13 = int_to_ptr.vmem [resolvable:$true] %s15_s13 }
   0x3   :  { %s504_s14 = scalar_lea.vmem %s16_s13, 2112  ;;  %p509_p1 = scmp.lt.s32.totalorder %s16_s13, %s16_s13 }
   0x4   :  { %p505_p0 = scmp.ne.s32.totalorder %s16_s13, %s504_s14  ;;  %p510_p2 = scmp.lt.s32.totalorder %s504_s14, %s504_s14 }
   0x6   :  { %p511_p3 = por %p510_p2, %p509_p1 }
   0x8   :  { %p512_p4 = pnand %p511_p3, %p505_p0 }
   0xa   :  { %515 = shalt.err (!%p512_p4)
}
   0xb   :  { %s541_s15 = smov 64   ;;  %s542_s16 = smov 4  }
   0xc   :  { %21 = dma.hbm_to_vmem [thread:$0]  %s613_s0, 2112, %s16_s13, [#allocation3], %s541_s15, %s541_s15, %s542_s16  }
   0xd   :  { %536 = dma.done.wait [#allocation3], 2112  }
   0xe   :  { %537 = vsyncadd [#allocation3], 4294965184  ;;  %v543_v0 = vmov 0.0   ;;  %vm544_vm0 = vmmov 0   ;;  %vm81_vm1 = vcmask 1043456   ;;  %v471_v3 = vld [vmem:[%s615_s2] sm:$0xff]  }
   0xf   :  { %419 = vmatprep.subr.bf16.mxu0 %v543_v0  ;;  %421 = vmatprep.mubr.msk.bf16.mxu0 %vm544_vm0, %v543_v0  ;;  %v30_v1 = vld [vmem:[#allocation2] sm:$0xf]  ;;  %vm77_vm2 = vcmask 64512   ;;  %v473_v5 = vld [vmem:[#allocation2 + $0x34] sm:$0xff]   ;;  %v474_v6 = vld [vmem:[#allocation2 + $0x2c] sm:$0xff]  }
  0x10   :  { %425 = vmatprep.subr.bf16.mxu1 %v543_v0  ;;  %441 = vmatprep.mubr.msk.bf16.mxu1 %vm544_vm0, %v543_v0  ;;  %v83_v2 = vsel %vm81_vm1, %v30_v1, 0  ;;  %v472_v4 = vld [vmem:[#allocation2 + $0x3c] sm:$0xff]   ;;  %v475_v7 = vld [vmem:[#allocation2 + $0x24] sm:$0xff]   ;;  %v477_v9 = vld [vmem:[#allocation2 + $0x14] sm:$0xff]  }
  0x11   :  { %420 = vmatpush3.bf16.msra.mxu0 %v83_v2  ;;  %426 = vmatpush3.bf16.msra.mxu1 %v472_v4  ;;  %v476_v8 = vld [vmem:[#allocation2 + $0x1c] sm:$0xff]   ;;  %v478_v10 = vld [vmem:[#allocation2 + $0xc] sm:$0xff]   ;;  %v479_v11 = vld [vmem:[#allocation2 + $0x4] sm:$0xff]  }
  0x12   :  { %445 = vmatprep.subr.bf16.mxu0 %v543_v0  ;;  %427 = vmatprep.subr.bf16.mxu1 %v543_v0  ;;  %v480_v12 = vld [vmem:[#allocation2 + $0x7c] sm:$0xff]   ;;  %v481_v13 = vld [vmem:[#allocation2 + $0x74] sm:$0xff]   ;;  %v482_v14 = vld [vmem:[#allocation2 + $0x6c] sm:$0xff]  }
  0x13   :  { %v483_v15 = vld [vmem:[#allocation2 + $0x64] sm:$0xff]   ;;  %v484_v16 = vld [vmem:[#allocation2 + $0x5c] sm:$0xff]   ;;  %v485_v27 = vld [vmem:[#allocation2 + $0x54] sm:$0xff]  }
  0x14   :  { %422 = vmatmul.mubr.msk.bf16.vlgmr.msra.gmra.mxu0 %vm77_vm2, %v471_v3  ;;  %v369_v17 = vld [vmem:[%s614_s1] ss:$0 sm:$0xff]  ;;  %v486_v28 = vld [vmem:[#allocation2 + $0x4c] sm:$0xff]   ;;  %v487_v29 = vld [vmem:[#allocation2 + $0x44] sm:$0xff]  }
  0x15   :  { %461 = vmatprep.mubr.msk.bf16.mxu0 %vm544_vm0, %v543_v0  ;;  %428 = vmatpush3.bf16.msra.mxu1 %v473_v5  ;;  %v372_v30 = vld [vmem:[%s614_s1 + $0x1] ss:$0 sm:$0xff]  ;;  %v381_v40 = vld [vmem:[%s614_s1 + $0x2] ss:$0 sm:$0xff]  ;;  %s545_s1 = smov [#allocation5]  }
  0x16   :  { %429 = vmatprep.subr.bf16.mxu1 %v543_v0  ;;  %446 = vmatpush3.bf16.msra.mxu0 %v480_v12  ;;  %s357_s25 = sshll.u32 %s545_s1, 4  ;;  %s358_s25 = int_to_ptr.vmem [resolvable:$true] %s357_s25 }
  0x17   :  { %447 = vmatprep.subr.bf16.mxu0 %v543_v0  ;;  %s516_s26 = scalar_lea.vmem %s358_s25, 128  ;;  %p521_p6 = scmp.lt.s32.totalorder %s358_s25, %s358_s25 }
  0x18   :  { %p517_p5 = scmp.ne.s32.totalorder %s358_s25, %s516_s26  ;;  %p522_p7 = scmp.lt.s32.totalorder %s516_s26, %s516_s26 }
  0x19   :  { %430 = vmatpush3.bf16.msra.mxu1 %v474_v6 }
  0x1a   :  { %431 = vmatprep.subr.bf16.mxu1 %v543_v0  ;;  %448 = vmatpush3.bf16.msra.mxu0 %v481_v13  ;;  %p523_p8 = por %p522_p7, %p521_p6 }
  0x1b   :  { %449 = vmatprep.subr.bf16.mxu0 %v543_v0 }
  0x1c   :  { %p524_p9 = pnand %p523_p8, %p517_p5 }
  0x1d   :  { %432 = vmatpush3.bf16.msra.mxu1 %v475_v7 }
  0x1e   :  { %433 = vmatprep.subr.bf16.mxu1 %v543_v0  ;;  %450 = vmatpush3.bf16.msra.mxu0 %v482_v14 }
  0x1f   :  { %451 = vmatprep.subr.bf16.mxu0 %v543_v0 }
  0x21   :  { %434 = vmatpush3.bf16.msra.mxu1 %v476_v8 }
  0x22   :  { %435 = vmatprep.subr.bf16.mxu1 %v543_v0  ;;  %452 = vmatpush3.bf16.msra.mxu0 %v483_v15 }
  0x23   :  { %453 = vmatprep.subr.bf16.mxu0 %v543_v0 }
  0x25   :  { %436 = vmatpush3.bf16.msra.mxu1 %v477_v9 }
  0x26   :  { %437 = vmatprep.subr.bf16.mxu1 %v543_v0  ;;  %454 = vmatpush3.bf16.msra.mxu0 %v484_v16 }
  0x27   :  { %455 = vmatprep.subr.bf16.mxu0 %v543_v0 }
  0x29   :  { %438 = vmatpush3.bf16.msra.mxu1 %v478_v10 }
  0x2a   :  { %439 = vmatprep.subr.bf16.mxu1 %v543_v0  ;;  %456 = vmatpush3.bf16.msra.mxu0 %v485_v27 }
  0x2b   :  { %457 = vmatprep.subr.bf16.mxu0 %v543_v0 }
  0x2d   :  { %440 = vmatpush3.bf16.msra.mxu1 %v479_v11 }
  0x2e   :  { %458 = vmatpush3.bf16.msra.mxu0 %v486_v28 }
  0x2f   :  { %459 = vmatprep.subr.bf16.mxu0 %v543_v0 }
  0x32   :  { %460 = vmatpush3.bf16.msra.mxu0 %v487_v29 }
  0xd4   :  { %v119_v18 = vpop.f32.mrf.mxu0 }
  0xd5   :  { %v120_v20 = vadd.f32 %v369_v17, %v119_v18 }
  0xd6   :  { %v423_v19 = vpop.f32.mrf.mxu0 }
  0xd7   :  { %v126_v24 = vmax.f32 %v120_v20, 0.0 }
  0xd8   :  { %v122_v21 = vpop.f32.mrf.mxu0 }
  0xd9   :  { %v123_v22 = vadd.f32 %v369_v17, %v122_v21 }
  0xda   :  { %v424_v23 = vpop.f32.mrf.mxu0 }
  0xdb   :  { %v127_v25 = vmax.f32 %v123_v22, 0.0 }
  0xdd   :  { %v128_v26 = vpack.c.bf16 %v127_v25, %v126_v24 }
  0xdf   :  { %442 = vmatmul.mubr.bf16.vlgmr.msra.gmra.mxu1 %v128_v26 }
 0x19f   :  { %v215_v31 = vpop.f32.mrf.mxu1 }
 0x1a0   :  { %v216_v33 = vadd.f32 %v372_v30, %v215_v31 }
 0x1a1   :  { %v443_v32 = vpop.f32.mrf.mxu1 }
 0x1a2   :  { %v222_v37 = vmax.f32 %v216_v33, 0.0 }
 0x1a3   :  { %v218_v34 = vpop.f32.mrf.mxu1 }
 0x1a4   :  { %v219_v35 = vadd.f32 %v372_v30, %v218_v34 }
 0x1a5   :  { %v444_v36 = vpop.f32.mrf.mxu1 }
 0x1a6   :  { %v223_v38 = vmax.f32 %v219_v35, 0.0 }
 0x1a8   :  { %v224_v39 = vpack.c.bf16 %v223_v38, %v222_v37 }
 0x1aa   :  { %462 = vmatmul.mubr.bf16.vlgmr.msra.gmra.mxu0 %v224_v39 }
 0x26a   :  { %v311_v41 = vpop.f32.mrf.mxu0 }
 0x26b   :  { %v312_v42 = vadd.f32 %v381_v40, %v311_v41 }
 0x26c   :  { %v463_v43 = vpop.f32.mrf.mxu0 }
 0x26d   :  { %318 = vmax.xlane.f32.xlu0 %v312_v42 }
 0x26e   :  { %v314_v44 = vpop.f32.mrf.mxu0 }
 0x26f   :  { %v315_v45 = vadd.f32 %v381_v40, %v314_v44 }
 0x270   :  { %v464_v46 = vpop.f32.mrf.mxu0 }
 0x271   :  { %320 = vmax.xlane.f32.xlu0 %v315_v45 }
 0x2f6   :  { %v319_v47 = vpop.xlane.xlu0 %318 }
 0x2f7   :  { %v322_v48 = vsub.f32 %v312_v42, %v319_v47 }
 0x2f9   :  { %v324_v49 = vmul.f32 1.442695, %v322_v48 }
 0x2fa   :  { %v321_v50 = vpop.xlane.xlu0 %320 }
 0x2fb   :  { %488 = vpow2.f32 %v324_v49  ;;  %v323_v51 = vsub.f32 %v315_v45, %v321_v50 }
 0x2fd   :  { %v326_v52 = vmul.f32 1.442695, %v323_v51 }
 0x2ff   :  { %490 = vpow2.f32 %v326_v52 }
 0x308   :  { %v489_v53 = vpop.eup %488 }
 0x309   :  { %328 = vadd.xlane.f32.xlu1 %v489_v53 }
 0x30c   :  { %v491_v54 = vpop.eup %490 }
 0x30d   :  { %330 = vadd.xlane.f32.xlu1 %v491_v54 }
 0x392   :  { %v329_v55 = vpop.xlane.xlu1 %328 }
 0x393   :  { %492 = vrcp.f32 %v329_v55 }
 0x396   :  { %v331_v56 = vpop.xlane.xlu1 %330 }
 0x397   :  { %494 = vrcp.f32 %v331_v56 }
 0x3a0   :  { %v493_v57 = vpop.eup %492 }
 0x3a1   :  { %v334_v58 = vmul.f32 %v493_v57, %v329_v55 }
 0x3a3   :  { %v336_v59 = vsub.f32 2.0, %v334_v58 }
 0x3a4   :  { %v495_v60 = vpop.eup %494 }
 0x3a5   :  { %v335_v61 = vmul.f32 %v495_v60, %v331_v56  ;;  %v338_v62 = vmul.f32 %v493_v57, %v336_v59 }
 0x3a7   :  { %v337_v63 = vsub.f32 2.0, %v335_v61  ;;  %v340_v2 = vmul.f32 %v489_v53, %v338_v62 }
 0x3a9   :  { %v339_v0 = vmul.f32 %v495_v60, %v337_v63 }
 0x3ab   :  { %v341_v1 = vmul.f32 %v491_v54, %v339_v0 }
 0x3ad   :  { %v397_v3 = vpack.c.bf16 %v341_v1, %v340_v2 }
 0x3af   :  { %398 = vst [vmem:[#allocation5] sm:$0xff] %v397_v3  }
 0x3b0   :  { %527 = shalt.err (!%p524_p9)
}
 0x3b1   :  { %363 = dma.vmem_to_hbm [thread:$0]  %s358_s25, 128, %s616_s3, [#allocation4], %s541_s15, %s541_s15, %s542_s16  }
 0x3b2   :  { %538 = dma.done.wait [#allocation4], 128  }
 0x3b3   :  { %539 = vsyncadd [#allocation4], 4294967168 }
 0x3b4   :  { %367 = vsyncpa [#allocation3], 1 }
 0x3b5   :  { %368 = vsyncpa [#allocation4], 1 }

</bundles_post_ra>
